<compile_context>
chip_gen: v5e
topology: v5e:2x2
jax: 0.10.0
libtpu: 0.0.40
codegen_flags: <defaults>
</compile_context>

<pallas_src>
import functools

import jax
import jax.numpy as jnp
from jax import lax
from jax.experimental import pallas as pl
from jax.experimental.pallas import tpu as pltpu

LANE = 128
SUBLANE = 8
MAX_TILE_BYTES_PER_INPUT = 4 * 1024 * 1024   # ~4 MiB / input / grid step
VMEM_LIMIT_BYTES = 32 * 1024 * 1024          # lifts v5e's 16 MiB default, safe on v7x
PALLAS_MIN_ELEMS = 1 << 20                   # below this, fused XLA wins


def _round_up(x, m):
    return (x + m - 1) // m * m


def _is_v7x():
    """Best-effort detection of a 2-TensorCore chip (v7x)."""
    try:
        kind = jax.devices()[0].device_kind.lower()
    except Exception:
        return False
    return "v7" in kind


def _sq_diff_partial_kernel(pred_ref, true_ref, out_ref, *, steps, tile_rows,
                            valid_rows, needs_mask):
    """Accumulate a vreg-shaped (8, 128) partial sum of (pred - true)^2.

    Grid = (n_splits, steps): axis 0 holds one accumulator block per split
    (shardable across v7x TensorCores via CORE_PARALLEL), axis 1 is the
    sequential reduction over row tiles.  The output block index is constant
    along axis 1, so the accumulator stays resident in VMEM.
    """
    split = pl.program_id(0)
    step = pl.program_id(1)

    @pl.when(step == 0)
    def _():
        out_ref[...] = jnp.zeros_like(out_ref)

    diff = pred_ref[...].astype(jnp.float32) - true_ref[...].astype(jnp.float32)
    sq = diff * diff

    if needs_mask:
        # Zero the rows of the (possibly overhanging) last tile; `valid_rows`
        # is a static Python int baked at trace time, no scalar prefetch needed.
        row0 = (split * steps + step) * tile_rows
        row_ids = row0 + lax.broadcasted_iota(jnp.int32, sq.shape, 0)
        sq = jnp.where(row_ids < valid_rows, sq, 0.0)

    # Reduce only along the row-tile axis: the reshape keeps the (8, 128) vreg
    # tile as the trailing dims, so this lowers to plain VPU adds across vregs.
    out_ref[...] += sq.reshape(-1, SUBLANE, LANE).sum(axis=0)


def _pallas_sq_diff_sum(slab_p, slab_t):
    """Sum of squared differences over a (rows, 128) slab (same dtype inputs)."""
    rows0, lane = slab_p.shape
    assert lane == LANE and slab_t.shape == slab_p.shape

    itemsize = jnp.dtype(slab_p.dtype).itemsize
    # Packed sublane multiple: 8 for 4-byte, 16 for 2-byte, 32 for 1-byte dtypes.
    packed_sub = max(SUBLANE, (SUBLANE * 4) // max(itemsize, 1))
    cap_rows = MAX_TILE_BYTES_PER_INPUT // (LANE * itemsize)
    cap_rows = max(packed_sub, (cap_rows // packed_sub) * packed_sub)
    tile_rows = min(_round_up(rows0, packed_sub), cap_rows)

    # 2-way split only on v7x (2 TensorCores) and only when each core gets at
    # least one full tile of work; single-TC chips (v5e/v6e) keep 1 split.
    n_splits = 2 if (_is_v7x() and rows0 >= 2 * cap_rows) else 1
    steps = pl.cdiv(rows0, n_splits * tile_rows)
    covered_rows = n_splits * steps * tile_rows
    needs_mask = covered_rows > rows0

    kernel = functools.partial(
        _sq_diff_partial_kernel,
        steps=steps, tile_rows=tile_rows, valid_rows=rows0, needs_mask=needs_mask)

    in_map = lambda c, i: (c * steps + i, 0)
    if n_splits == 2:
        dim_sem = (pltpu.CORE_PARALLEL, pltpu.ARBITRARY)
    else:
        dim_sem = ("arbitrary", "arbitrary")

    cost = pl.CostEstimate(
        flops=3 * rows0 * LANE,
        transcendentals=0,
        bytes_accessed=2 * rows0 * LANE * itemsize + n_splits * SUBLANE * LANE * 4)

    partials = pl.pallas_call(
        kernel,
        out_shape=jax.ShapeDtypeStruct((n_splits * SUBLANE, LANE), jnp.float32),
        grid_spec=pltpu.PrefetchScalarGridSpec(
            num_scalar_prefetch=0,
            grid=(n_splits, steps),
            in_specs=[
                pl.BlockSpec((tile_rows, LANE), in_map),
                pl.BlockSpec((tile_rows, LANE), in_map),
            ],
            out_specs=pl.BlockSpec((SUBLANE, LANE), lambda c, i: (c, 0)),
        ),
        compiler_params=pltpu.CompilerParams(
            dimension_semantics=dim_sem,
            vmem_limit_bytes=VMEM_LIMIT_BYTES,
        ),
        cost_estimate=cost,
    )(slab_p, slab_t)

    # Single cheap cross-lane reduce over the tiny (n_splits*8, 128) partials.
    return jnp.sum(partials)


def interpolator_loss(y_pred, y_true, alpha=1.0, *, min_pallas_elems=PALLAS_MIN_ELEMS):
    """alpha * mean((y_pred - y_true)^2), matching InterpolatorLoss.forward."""
    assert y_pred.shape == y_true.shape
    n_elem = y_pred.size

    common = jnp.promote_types(y_pred.dtype, y_true.dtype)
    if y_pred.dtype != common:
        y_pred = y_pred.astype(common)
    if y_true.dtype != common:
        y_true = y_true.astype(common)

    # Small-input fallback: kernel launch + pipeline ramp dominate below ~1M
    # elements; a fused XLA reduction is strictly faster there.
    if n_elem < min_pallas_elems:
        d = y_pred.astype(jnp.float32) - y_true.astype(jnp.float32)
        return (alpha * jnp.mean(d * d)).astype(jnp.float32)

    # Flatten in the native dtype (pure reshape of contiguous data: no copy).
    flat_p = jnp.ravel(y_pred)
    flat_t = jnp.ravel(y_true)
    main_n = (n_elem // LANE) * LANE

    total = jnp.float32(0.0)
    if main_n:
        # Zero-copy when n_elem is a multiple of 128 (the common case); only
        # for unaligned sizes do we slice the 128-aligned prefix (review
        # option (b); the <128-element tail is handled below in XLA).
        mp = flat_p if main_n == n_elem else flat_p[:main_n]
        mt = flat_t if main_n == n_elem else flat_t[:main_n]
        total = _pallas_sq_diff_sum(mp.reshape(main_n // LANE, LANE),
                                    mt.reshape(main_n // LANE, LANE))
    if main_n != n_elem:
        tp = flat_p[main_n:].astype(jnp.float32)
        tt = flat_t[main_n:].astype(jnp.float32)
        total = total + jnp.sum((tp - tt) ** 2)

    return (alpha * total / n_elem).astype(jnp.float32)


if __name__ == "__main__":
    key = jax.random.PRNGKey(0)
    k1, k2 = jax.random.split(key)
    y_pred = jax.random.normal(k1, (2, 4, 16, 16), dtype=jnp.float32)
    y_true = jax.random.normal(k2, (2, 4, 16, 16), dtype=jnp.float32)

    alpha = 1.0
    # Force the Pallas path so the kernel itself is exercised at this small
    # shape (the default threshold would route it to the XLA fallback).
    loss = interpolator_loss(y_pred, y_true, alpha=alpha, min_pallas_elems=0)
    loss = jax.block_until_ready(loss)

    # Reference check in plain JAX (mirrors the PyTorch module).
    ref = alpha * jnp.mean((y_pred - y_true) ** 2)
    assert jnp.allclose(loss, ref, rtol=1e-6, atol=1e-6), (loss, ref)

    print("KERNEL_OK")
</pallas_src>

<mosaic_0001>
module attributes {stable_mosaic.version = 11 : i64} {
  func.func @_sq_diff_partial_kernel(%arg0: i32, %arg1: i32, %arg2: memref<16x128xf32, #tpu.memory_space<vmem>>, %arg3: memref<16x128xf32, #tpu.memory_space<vmem>>, %arg4: memref<8x128xf32, #tpu.memory_space<vmem>>) attributes {dimension_semantics = [#tpu.dimension_semantics<arbitrary>, #tpu.dimension_semantics<arbitrary>], iteration_bounds = array<i64: 1, 1>, scalar_prefetch = 0 : i64, scratch_operands = 0 : i64, tpu.core_type = #tpu.core_type<tc>, window_params = [{transform_indices = @transform_0, window_bounds = array<i64: 16, 128>}, {transform_indices = @transform_1, window_bounds = array<i64: 16, 128>}, {transform_indices = @transform_2, window_bounds = array<i64: 8, 128>}]} {
    %c0_i32 = arith.constant 0 : i32
    %0 = arith.cmpi eq, %arg1, %c0_i32 : i32
    %1 = arith.extui %0 : i1 to i32
    %c0_i32_0 = arith.constant 0 : i32
    %2 = arith.cmpi ne, %1, %c0_i32_0 : i32
    scf.if %2 {
      %cst_8 = arith.constant 0.000000e+00 : f32
      %12 = vector.broadcast %cst_8 : f32 to vector<8x128xf32>
      %c0_9 = arith.constant 0 : index
      %c0_10 = arith.constant 0 : index
      %13 = vector.load %arg4[%c0_9, %c0_10] : memref<8x128xf32, #tpu.memory_space<vmem>>, vector<8x128xf32>
      tpu.vector_store %arg4[%c0_9, %c0_10], %12 {strides = array<i32>} : memref<8x128xf32, #tpu.memory_space<vmem>>, vector<8x128xf32>,
    } else {
    }
    %c0 = arith.constant 0 : index
    %c0_1 = arith.constant 0 : index
    %3 = vector.load %arg2[%c0, %c0_1] : memref<16x128xf32, #tpu.memory_space<vmem>>, vector<16x128xf32>
    %c0_2 = arith.constant 0 : index
    %c0_3 = arith.constant 0 : index
    %4 = vector.load %arg3[%c0_2, %c0_3] : memref<16x128xf32, #tpu.memory_space<vmem>>, vector<16x128xf32>
    %5 = arith.subf %3, %4 : vector<16x128xf32>
    %6 = arith.mulf %5, %5 : vector<16x128xf32>
    %c0_4 = arith.constant 0 : index
    %c0_5 = arith.constant 0 : index
    %7 = vector.load %arg4[%c0_4, %c0_5] : memref<8x128xf32, #tpu.memory_space<vmem>>, vector<8x128xf32>
    %8 = vector.shape_cast %6 : vector<16x128xf32> to vector<2x8x128xf32>
    %cst = arith.constant dense<0.000000e+00> : vector<8x128xf32>
    %9 = vector.multi_reduction <add>, %8, %cst [0] : vector<2x8x128xf32> to vector<8x128xf32>
    %10 = arith.addf %7, %9 : vector<8x128xf32>
    %c0_6 = arith.constant 0 : index
    %c0_7 = arith.constant 0 : index
    %11 = vector.load %arg4[%c0_6, %c0_7] : memref<8x128xf32, #tpu.memory_space<vmem>>, vector<8x128xf32>
    tpu.vector_store %arg4[%c0_6, %c0_7], %10 {strides = array<i32>} : memref<8x128xf32, #tpu.memory_space<vmem>>, vector<8x128xf32>,
    return
  }
  func.func @transform_0(%arg0: i32, %arg1: i32) -> (i32, i32) {
    %c1_i32 = arith.constant 1 : i32
    %0 = arith.muli %arg0, %c1_i32 : i32
    %1 = arith.addi %0, %arg1 : i32
    %c0_i32 = arith.constant 0 : i32
    %c0_i32_0 = arith.constant 0 : i32
    return %1, %c0_i32 : i32, i32
  }
  func.func @transform_1(%arg0: i32, %arg1: i32) -> (i32, i32) {
    %c1_i32 = arith.constant 1 : i32
    %0 = arith.muli %arg0, %c1_i32 : i32
    %1 = arith.addi %0, %arg1 : i32
    %c0_i32 = arith.constant 0 : i32
    %c0_i32_0 = arith.constant 0 : i32
    return %1, %c0_i32 : i32, i32
  }
  func.func @transform_2(%arg0: i32, %arg1: i32) -> (i32, i32) {
    %c0_i32 = arith.constant 0 : i32
    %c0_i32_0 = arith.constant 0 : i32
    return %arg0, %c0_i32 : i32, i32
  }
}

</mosaic_0001>

<bundles_post_ra>
// kernel: tpu_custom_call.1
= control target key start
LH: loop header
LB: loop body
LE: loop exit
PB: predicated region body
PF: predicated region fallthrough
CT: control target
= control target key end

     0   :  { %7 = vsyncpa [#allocation3], 0  ;;  %s204_s0 = inlined_call_operand.hbm [shape: f32[16,128], index: 0, kind: input, shape index: {}]   ;;  %s205_s1 = inlined_call_operand.hbm [shape: f32[16,128], index: 1, kind: input, shape index: {}]   ;;  %s206_s2 = inlined_call_operand.hbm [shape: f32[8,128], index: 2, kind: output, shape index: {}]  }
   0x1   :  { %8 = vsyncpa [#allocation6], 0 }
   0x2   :  { %9 = vsyncpa [#allocation4], 0  ;;  %s18_s11 = sshll.u32 %s204_s0, 4  ;;  %s175_s12 = smov [#allocation2]   ;;  %s19_s11 = int_to_ptr.hbm [resolvable:$true] %s18_s11 }
   0x3   :  { %s20_s13 = sshll.u32 %s175_s12, 4  ;;  %s35_s16 = sshll.u32 %s205_s1, 4  ;;  %s21_s13 = int_to_ptr.vmem [resolvable:$true] %s20_s13  ;;  %s36_s16 = int_to_ptr.hbm [resolvable:$true] %s35_s16 }
   0x4   :  { %s176_s17 = smov 128   ;;  %s177_s18 = smov 8  }
   0x5   :  { %26 = dma.hbm_to_vmem [thread:$0]  %s19_s11, 256, %s21_s13, [#allocation3], %s176_s17, %s176_s17, %s177_s18  }
   0x6   :  { %s178_s19 = smov [#allocation5]  }
   0x7   :  { %s37_s20 = sshll.u32 %s178_s19, 4  ;;  %s38_s20 = int_to_ptr.vmem [resolvable:$true] %s37_s20 }
   0x8   :  { %43 = dma.hbm_to_vmem [thread:$0]  %s36_s16, 256, %s38_s20, [#allocation6], %s176_s17, %s176_s17, %s177_s18  }
   0x9   :  { %169 = dma.done.wait [#allocation3], 256  }
   0xa   :  { %170 = vsyncadd [#allocation3], 4294967040 }
   0xb   :  { %171 = dma.done.wait [#allocation6], 256  }
   0xc   :  { %172 = vsyncadd [#allocation6], 4294967040  ;;  %v61_v0 = vld [vmem:[#allocation2] sm:$0xff]  ;;  %v62_v1 = vld [vmem:[#allocation2 + $0x8] sm:$0xff]  ;;  %s179_s0 = smov [#allocation7]   ;;  %s80_s23 = sshll.u32 %s206_s2, 4  ;;  %s81_s23 = int_to_ptr.hbm [resolvable:$true] %s80_s23 }
   0xd   :  { %v63_v2 = vld [vmem:[#allocation5] sm:$0xff]  ;;  %v64_v3 = vld [vmem:[#allocation5 + $0x8] sm:$0xff]  ;;  %s78_s1 = sshll.u32 %s179_s0, 4  ;;  %s79_s1 = int_to_ptr.vmem [resolvable:$true] %s78_s1 }
   0xe   :  { %v65_v4 = vsub.f32 %v61_v0, %v63_v2  ;;  %v66_v5 = vsub.f32 %v62_v1, %v64_v3 }
  0x10   :  { %v67_v6 = vmul.f32 %v65_v4, %v65_v4  ;;  %v68_v7 = vmul.f32 %v66_v5, %v66_v5 }
  0x12   :  { %v70_v8 = vadd.f32 %v68_v7, %v67_v6 }
  0x14   :  { %72 = vst [vmem:[#allocation7] sm:$0xff] %v70_v8 }
  0x15   :  { %83 = dma.vmem_to_hbm [thread:$0]  %s79_s1, 128, %s81_s23, [#allocation4]  }
  0x16   :  { %173 = dma.done.wait [#allocation4], 128  }
  0x17   :  { %174 = vsyncadd [#allocation4], 4294967168 }
  0x18   :  { %88 = vsyncpa [#allocation3], 1 }
  0x19   :  { %89 = vsyncpa [#allocation6], 1 }
  0x1a   :  { %90 = vsyncpa [#allocation4], 1 }

</bundles_post_ra>
